<compile_context>
chip_gen: v7x
topology: tpu7x:2x2x1
jax: 0.10.0
libtpu: 0.0.40
codegen_flags: <defaults>
</compile_context>

<pallas_src>
import functools
import math

import jax
import jax.numpy as jnp
from jax import lax
from jax.experimental import pallas as pl
from jax.experimental.pallas import tpu as pltpu


def _round_up(x, m):
    return ((x + m - 1) // m) * m


def _sq_kernel(x_ref, w_ref, b_ref, o_ref, *, tn, matmul_dtype):
    # x_ref: (tm, Ep)  input row tile (all embedding columns, for the matmul)
    # w_ref: (tn, Ep)  nn.Linear weight rows for this output-column block (out, in)
    # b_ref: (1, tn)   bias slice
    # o_ref: (tm, tn)  output tile
    x = x_ref[...]

    if matmul_dtype is None:
        xm, wm = x, w_ref[...]
    else:
        xm = x.astype(matmul_dtype)
        wm = w_ref[...].astype(matmul_dtype)

    # x @ W.T without materializing W.T: contract dim 1 of x with dim 1 of W.
    logits = lax.dot_general(
        xm, wm,
        dimension_numbers=(((1,), (1,)), ((), ())),
        preferred_element_type=jnp.float32,
    )
    logits = logits + b_ref[...].astype(jnp.float32)
    gate = jax.nn.sigmoid(logits)  # exp lands on the EUP slot; numerically stable

    # Columns of x that line up with this output-column block.
    if tn == x_ref.shape[1]:
        x_cols = x                              # single column block: no slice
    else:
        col0 = pl.multiple_of(pl.program_id(0) * tn, 128)
        x_cols = x_ref[:, pl.ds(col0, tn)]

    o_ref[...] = (x_cols.astype(jnp.float32) * gate).astype(o_ref.dtype)


def sq_layer_1d(x, weight, bias, *, tm=256, tn=None, matmul_dtype=jnp.bfloat16):
    """SQLayer1d forward: x * sigmoid(x @ weight.T + bias).

    x:      (..., E)
    weight: (E, E) in nn.Linear layout (out_features, in_features)
    bias:   (E,)
    tm:     row tile over the flattened (batch*seq) dim
    tn:     output-column tile; None => whole (padded) E resident per step
    matmul_dtype: dtype fed to the MXU (accumulation is always f32);
                  None => use the input dtype unchanged (exact path).
    """
    orig_shape = x.shape
    E = orig_shape[-1]
    x2d = x.reshape(-1, E)
    M = x2d.shape[0]

    # Lane-dense padding of the embedding dim; sublane-aligned row tile.
    Ep = _round_up(E, 128)
    tm = max(8, min(_round_up(tm, 8), _round_up(M, 8)))
    Mp = _round_up(M, tm)
    if tn is None:
        tn = Ep
    assert tn % 128 == 0 and Ep % tn == 0, "tn must be lane-aligned and divide padded E"

    xp = x2d
    if Mp != M or Ep != E:
        xp = jnp.pad(x2d, ((0, Mp - M), (0, Ep - E)))
    wp = weight if Ep == E else jnp.pad(weight, ((0, Ep - E), (0, Ep - E)))
    bp = (bias if Ep == E else jnp.pad(bias, (0, Ep - E))).reshape(1, Ep)

    n_col = Ep // tn
    n_row = Mp // tm

    x_bytes = jnp.dtype(x.dtype).itemsize
    w_bytes = jnp.dtype(weight.dtype).itemsize
    # Default pipeline double-buffers each block; leave ~30% + 2 MiB headroom.
    vmem_need = 2 * (tm * Ep + tm * tn) * x_bytes + 2 * (tn * Ep + tn) * w_bytes
    vmem_limit = int(min(max(int(vmem_need * 1.3) + (2 << 20), 32 << 20), 64 << 20))

    cost = pl.CostEstimate(
        flops=2 * Mp * Ep * Ep,
        transcendentals=Mp * Ep,
        bytes_accessed=2 * Mp * Ep * x_bytes + (Ep * Ep + Ep) * w_bytes,
    )

    kernel = functools.partial(_sq_kernel, tn=tn, matmul_dtype=matmul_dtype)

    out = pl.pallas_call(
        kernel,
        out_shape=jax.ShapeDtypeStruct((Mp, Ep), x.dtype),
        grid_spec=pltpu.PrefetchScalarGridSpec(
            num_scalar_prefetch=0,
            # Column blocks on the *outer* axis: the weight block's index is
            # constant over the inner row loop, so it is DMA'd once and stays
            # resident while row tiles stream through.
            grid=(n_col, n_row),
            in_specs=[
                pl.BlockSpec((tm, Ep), lambda j, i: (i, 0)),   # x row tile (all cols)
                pl.BlockSpec((tn, Ep), lambda j, i: (j, 0)),   # weight rows for block j
                pl.BlockSpec((1, tn), lambda j, i: (0, j)),    # bias slice
            ],
            out_specs=pl.BlockSpec((tm, tn), lambda j, i: (i, j)),
        ),
        compiler_params=pltpu.CompilerParams(
            dimension_semantics=("parallel", "parallel"),
            vmem_limit_bytes=vmem_limit,
        ),
        cost_estimate=cost,
    )(xp, wp, bp)

    if Mp != M or Ep != E:
        out = out[:M, :E]
    return out.reshape(orig_shape)


def _reference(x, weight, bias):
    return x * jax.nn.sigmoid(jnp.einsum("...i,oi->...o", x, weight) + bias)


if __name__ == "__main__":
    # Small shapes consistent with the module: (batch=2, seq=8, embed=32).
    B, S, E = 2, 8, 32
    key = jax.random.PRNGKey(0)
    kx, kw, kb = jax.random.split(key, 3)

    x = jax.random.normal(kx, (B, S, E), dtype=jnp.float32)

    # Deterministic params matching nn.Linear's U(-1/sqrt(E), 1/sqrt(E)) init.
    bound = 1.0 / math.sqrt(E)
    weight = jax.random.uniform(kw, (E, E), minval=-bound, maxval=bound,
                                dtype=jnp.float32)
    bias = jax.random.uniform(kb, (E,), minval=-bound, maxval=bound,
                              dtype=jnp.float32)

    ref = _reference(x, weight, bias)

    # Exact-precision path (f32 matmul) — tight check.
    out_f32 = jax.block_until_ready(sq_layer_1d(x, weight, bias, matmul_dtype=None))
    assert out_f32.shape == x.shape
    assert jnp.allclose(out_f32, ref, atol=1e-4, rtol=1e-4), "f32 path mismatch"

    # Default fast path (bf16 MXU inputs, f32 accumulation) — bf16-level check.
    out = jax.block_until_ready(sq_layer_1d(x, weight, bias))
    assert out.shape == x.shape
    assert jnp.allclose(out, ref, atol=3e-2, rtol=3e-2), "bf16 path mismatch"

    print("KERNEL_OK")
</pallas_src>

<mosaic_0001>
module attributes {stable_mosaic.version = 11 : i64} {
  func.func @_sq_kernel(%arg0: i32, %arg1: i32, %arg2: memref<16x128xf32, #tpu.memory_space<vmem>>, %arg3: memref<128x128xf32, #tpu.memory_space<vmem>>, %arg4: memref<1x128xf32, #tpu.memory_space<vmem>>, %arg5: memref<16x128xf32, #tpu.memory_space<vmem>>) attributes {dimension_semantics = [#tpu.dimension_semantics<parallel>, #tpu.dimension_semantics<parallel>], iteration_bounds = array<i64: 1, 1>, scalar_prefetch = 0 : i64, scratch_operands = 0 : i64, tpu.core_type = #tpu.core_type<tc>, window_params = [{transform_indices = @transform_0, window_bounds = array<i64: 16, 128>}, {transform_indices = @transform_1, window_bounds = array<i64: 128, 128>}, {transform_indices = @transform_2, window_bounds = array<i64: 1, 128>}, {transform_indices = @transform_3, window_bounds = array<i64: 16, 128>}]} {
    %c0 = arith.constant 0 : index
    %c0_0 = arith.constant 0 : index
    %0 = vector.load %arg2[%c0, %c0_0] : memref<16x128xf32, #tpu.memory_space<vmem>>, vector<16x128xf32>
    %c0_1 = arith.constant 0 : index
    %c0_2 = arith.constant 0 : index
    %1 = vector.load %arg3[%c0_1, %c0_2] : memref<128x128xf32, #tpu.memory_space<vmem>>, vector<128x128xf32>
    %cst = arith.constant dense<0.000000e+00> : vector<16x128xf32>
    %2 = tpu.matmul %0, %1, %cst {dimension_numbers = #tpu.dot_dimension_numbers<[1], [1], [0], [0], [0, 0, 1, 0], [], []>} : vector<16x128xf32>, vector<128x128xf32>, vector<16x128xf32> -> vector<16x128xf32>
    %c0_3 = arith.constant 0 : index
    %c0_4 = arith.constant 0 : index
    %3 = vector.load %arg4[%c0_3, %c0_4] : memref<1x128xf32, #tpu.memory_space<vmem>>, vector<1x128xf32>
    %4 = vector.broadcast %3 : vector<1x128xf32> to vector<16x128xf32>
    %5 = arith.addf %2, %4 : vector<16x128xf32>
    %6 = arith.negf %5 : vector<16x128xf32>
    %7 = math.exp %6 : vector<16x128xf32>
    %cst_5 = arith.constant 1.000000e+00 : f32
    %8 = vector.broadcast %cst_5 : f32 to vector<16x128xf32>
    %9 = arith.addf %8, %7 : vector<16x128xf32>
    %10 = arith.divf %8, %9 : vector<16x128xf32>
    %11 = arith.mulf %0, %10 : vector<16x128xf32>
    %c0_6 = arith.constant 0 : index
    %c0_7 = arith.constant 0 : index
    %12 = vector.load %arg5[%c0_6, %c0_7] : memref<16x128xf32, #tpu.memory_space<vmem>>, vector<16x128xf32>
    tpu.vector_store %arg5[%c0_6, %c0_7], %11 {strides = array<i32>} : memref<16x128xf32, #tpu.memory_space<vmem>>, vector<16x128xf32>,
    return
  }
  func.func @transform_0(%arg0: i32, %arg1: i32) -> (i32, i32) {
    %c0_i32 = arith.constant 0 : i32
    %c0_i32_0 = arith.constant 0 : i32
    return %arg1, %c0_i32 : i32, i32
  }
  func.func @transform_1(%arg0: i32, %arg1: i32) -> (i32, i32) {
    %c0_i32 = arith.constant 0 : i32
    %c0_i32_0 = arith.constant 0 : i32
    return %arg0, %c0_i32 : i32, i32
  }
  func.func @transform_2(%arg0: i32, %arg1: i32) -> (i32, i32) {
    %c0_i32 = arith.constant 0 : i32
    %c0_i32_0 = arith.constant 0 : i32
    return %c0_i32, %arg0 : i32, i32
  }
  func.func @transform_3(%arg0: i32, %arg1: i32) -> (i32, i32) {
    %c0_i32 = arith.constant 0 : i32
    return %arg1, %arg0 : i32, i32
  }
}

</mosaic_0001>

<bundles_post_ra>
// kernel: tpu_custom_call.1
= control target key start
LH: loop header
LB: loop body
LE: loop exit
PB: predicated region body
PF: predicated region fallthrough
CT: control target
= control target key end

     0   :  { %8 = vsyncpa [#allocation3], 0  ;;  %s423_s0 = inlined_call_operand.hbm [shape: f32[16,128], index: 0, kind: input, shape index: {}]   ;;  %s424_s1 = inlined_call_operand.hbm [shape: f32[128,128], index: 1, kind: input, shape index: {}]   ;;  %s425_s2 = inlined_call_operand.vmem [shape: f32[1,128], index: 2, kind: input, shape index: {}]   ;;  %s426_s3 = inlined_call_operand.hbm [shape: f32[16,128], index: 3, kind: output, shape index: {}]  }
   0x1   :  { %9 = vsyncpa [#allocation6], 0 }
   0x2   :  { %10 = vsyncpa [#allocation4], 0  ;;  %s350_s12 = smov [#allocation2]   ;;  %s278_s16 = scalar_lea.hbm %s423_s0, 256 }
   0x3   :  { %s16_s13 = sshll.u32 %s350_s12, 4  ;;  %p279_p0 = scmp.ne.s32.totalorder %s423_s0, %s278_s16  ;;  %s17_s13 = int_to_ptr.vmem [resolvable:$true] %s16_s13 }
   0x4   :  { %p282_p1 = scmp.lt.u32.totalorder %s278_s16, %s423_s0 }
   0x6   :  { %p284_p2 = pnand %p282_p1, %p279_p0 }
   0x8   :  { %287 = shalt.err (!%p284_p2)
}
   0x9   :  { %s288_s21 = scalar_lea.vmem %s17_s13, 256  ;;  %p293_p4 = scmp.lt.s32.totalorder %s17_s13, %s17_s13 }
   0xa   :  { %p289_p3 = scmp.ne.s32.totalorder %s17_s13, %s288_s21  ;;  %p294_p5 = scmp.lt.s32.totalorder %s288_s21, %s288_s21 }
   0xc   :  { %p295_p6 = por %p294_p5, %p293_p4 }
   0xe   :  { %p296_p7 = pnand %p295_p6, %p289_p3 }
  0x10   :  { %299 = shalt.err (!%p296_p7)
}
  0x11   :  { %s351_s22 = smov 128   ;;  %s352_s23 = smov 8  }
  0x12   :  { %22 = dma.hbm_to_vmem [thread:$0]  %s423_s0, 256, %s17_s13, [#allocation3], %s351_s22, %s351_s22, %s352_s23  }
  0x13   :  { %s353_s26 = smov [#allocation5]   ;;  %s300_s30 = scalar_lea.hbm %s424_s1, 2048 }
  0x14   :  { %s28_s27 = sshll.u32 %s353_s26, 4  ;;  %p301_p8 = scmp.ne.s32.totalorder %s424_s1, %s300_s30  ;;  %s29_s27 = int_to_ptr.vmem [resolvable:$true] %s28_s27 }
  0x15   :  { %p304_p9 = scmp.lt.u32.totalorder %s300_s30, %s424_s1 }
  0x17   :  { %p306_p10 = pnand %p304_p9, %p301_p8 }
  0x19   :  { %309 = shalt.err (!%p306_p10)
}
  0x1a   :  { %s310_s8 = scalar_lea.vmem %s29_s27, 2048  ;;  %p315_p12 = scmp.lt.s32.totalorder %s29_s27, %s29_s27 }
  0x1b   :  { %p311_p11 = scmp.ne.s32.totalorder %s29_s27, %s310_s8  ;;  %p316_p13 = scmp.lt.s32.totalorder %s310_s8, %s310_s8 }
  0x1d   :  { %p317_p0 = por %p316_p13, %p315_p12 }
  0x1f   :  { %p318_p1 = pnand %p317_p0, %p311_p11 }
  0x21   :  { %321 = shalt.err (!%p318_p1)
}
  0x22   :  { %34 = dma.hbm_to_vmem [thread:$0]  %s424_s1, 2048, %s29_s27, [#allocation6], %s351_s22, %s351_s22, %s352_s23  }
  0x23   :  { %344 = dma.done.wait [#allocation3], 256  }
  0x24   :  { %345 = vsyncadd [#allocation3], 4294967040 }
  0x25   :  { %346 = dma.done.wait [#allocation6], 2048  }
  0x26   :  { %347 = vsyncadd [#allocation6], 4294965248  ;;  %v45_v0 = vld [vmem:[#allocation5] sm:$0xff]  ;;  %v46_v1 = vld [vmem:[#allocation5 + $0x8] sm:$0xff]  ;;  %s354_s11 = smov [#allocation7]  }
  0x27   :  { %v47_v2 = vld [vmem:[#allocation5 + $0x10] sm:$0xff]  ;;  %v233_v3 = vpack.c.bf16 %v46_v1, %v45_v0  ;;  %v48_v4 = vld [vmem:[#allocation5 + $0x18] sm:$0xff]  ;;  %v49_v7 = vld [vmem:[#allocation5 + $0x20] sm:$0xff]  ;;  %s164_s12 = sshll.u32 %s354_s11, 4  ;;  %s165_s12 = int_to_ptr.vmem [resolvable:$true] %s164_s12 }
  0x28   :  { %v237_v5 = vpack.c.bf16 %v48_v4, %v47_v2  ;;  %v43_v6 = vld [vmem:[#allocation2] sm:$0xff]  ;;  %v50_v8 = vld [vmem:[#allocation5 + $0x28] sm:$0xff]  ;;  %v52_v11 = vld [vmem:[#allocation5 + $0x38] sm:$0xff]  ;;  %p327_p3 = scmp.lt.s32.totalorder %s165_s12, %s165_s12 }
  0x29   :  { %234 = vmatprep.subr.bf16.mxu0 %v233_v3  ;;  %230 = vmatprep.mubr.f32.mxu0 %v43_v6  ;;  %v241_v9 = vpack.c.bf16 %v50_v8, %v49_v7  ;;  %v51_v10 = vld [vmem:[#allocation5 + $0x30] sm:$0xff]  ;;  %v53_v13 = vld [vmem:[#allocation5 + $0x40] sm:$0xff]  ;;  %v54_v14 = vld [vmem:[#allocation5 + $0x48] sm:$0xff] }
  0x2a   :  { %236 = vmatpush3.bf16.xpose.msra.mxu0 %v233_v3  ;;  %v245_v12 = vpack.c.bf16 %v52_v11, %v51_v10  ;;  %v249_v15 = vpack.c.bf16 %v54_v14, %v53_v13  ;;  %v55_v16 = vld [vmem:[#allocation5 + $0x50] sm:$0xff]  ;;  %v56_v17 = vld [vmem:[#allocation5 + $0x58] sm:$0xff]  ;;  %v57_v19 = vld [vmem:[#allocation5 + $0x60] sm:$0xff] }
  0x2b   :  { %238 = vmatprep.subr.bf16.mxu0 %v237_v5  ;;  %v253_v18 = vpack.c.bf16 %v56_v17, %v55_v16  ;;  %v58_v20 = vld [vmem:[#allocation5 + $0x68] sm:$0xff]  ;;  %v59_v22 = vld [vmem:[#allocation5 + $0x70] sm:$0xff]  ;;  %v60_v23 = vld [vmem:[#allocation5 + $0x78] sm:$0xff] }
  0x2c   :  { %v257_v21 = vpack.c.bf16 %v58_v20, %v57_v19  ;;  %v261_v24 = vpack.c.bf16 %v60_v23, %v59_v22  ;;  %v44_v25 = vld [vmem:[#allocation2 + $0x8] sm:$0xff]  ;;  %v177_v26 = vld [vmem:[%s425_s2] ss:$0 sm:$0xff]  ;;  %s322_s2 = scalar_lea.vmem %s165_s12, 256 }
  0x2d   :  { %p323_p2 = scmp.ne.s32.totalorder %s165_s12, %s322_s2  ;;  %p328_p4 = scmp.lt.s32.totalorder %s322_s2, %s322_s2 }
  0x2f   :  { %p329_p5 = por %p328_p4, %p327_p3 }
  0x31   :  { %p330_p6 = pnand %p329_p5, %p323_p2 }
  0x32   :  { %240 = vmatpush3.bf16.xpose.msra.mxu0 %v237_v5 }
  0x33   :  { %242 = vmatprep.subr.bf16.mxu0 %v241_v9 }
  0x3a   :  { %244 = vmatpush3.bf16.xpose.msra.mxu0 %v241_v9 }
  0x3b   :  { %246 = vmatprep.subr.bf16.mxu0 %v245_v12 }
  0x42   :  { %248 = vmatpush3.bf16.xpose.msra.mxu0 %v245_v12 }
  0x43   :  { %250 = vmatprep.subr.bf16.mxu0 %v249_v15 }
  0x4a   :  { %252 = vmatpush3.bf16.xpose.msra.mxu0 %v249_v15 }
  0x4b   :  { %254 = vmatprep.subr.bf16.mxu0 %v253_v18 }
  0x52   :  { %256 = vmatpush3.bf16.xpose.msra.mxu0 %v253_v18 }
  0x53   :  { %258 = vmatprep.subr.bf16.mxu0 %v257_v21 }
  0x5a   :  { %260 = vmatpush3.bf16.xpose.msra.mxu0 %v257_v21 }
  0x5b   :  { %262 = vmatprep.subr.bf16.mxu0 %v261_v24 }
  0x62   :  { %264 = vmatpush3.bf16.xpose.msra.mxu0 %v261_v24 }
  0x69   :  { %231 = vmatmul.mubr.f32.vlgmr.msra.gmra.mrb[0].mxu0 %v44_v25 }
 0x13c   :  { %v232_v27 = vpop.f32.mrb[0].mxu0 }
 0x13d   :  { %v140_v28 = vadd.f32 %v232_v27, %v177_v26  ;;  %v134_v29 = vpop.f32.mrb[1].mxu0 }
 0x13e   :  { %v135_v30 = vadd.f32 %v177_v26, %v134_v29 }
 0x13f   :  { %v179_v31 = vmul.f32 -1.442695, %v140_v28 }
 0x140   :  { %v178_v32 = vmul.f32 -1.442695, %v135_v30 }
 0x141   :  { %270 = vpow2.f32 %v179_v31 }
 0x142   :  { %272 = vpow2.f32 %v178_v32 }
 0x14b   :  { %v271_v33 = vpop.eup %270 }
 0x14c   :  { %v273_v34 = vpop.eup %272  ;;  %v150_v35 = vadd.f32 1.0, %v271_v33 }
 0x14d   :  { %v149_v36 = vadd.f32 1.0, %v273_v34 }
 0x14e   :  { %274 = vrcp.f32 %v150_v35 }
 0x14f   :  { %276 = vrcp.f32 %v149_v36 }
 0x158   :  { %v275_v37 = vpop.eup %274 }
 0x159   :  { %v277_v38 = vpop.eup %276  ;;  %v156_v39 = vmul.f32 %v275_v37, %v44_v25 }
 0x15a   :  { %v155_v40 = vmul.f32 %v277_v38, %v43_v6 }
 0x15b   :  { %158 = vst [vmem:[#allocation7 + $0x8] sm:$0xff] %v156_v39 }
 0x15c   :  { %157 = vst [vmem:[#allocation7] sm:$0xff] %v155_v40 }
 0x15d   :  { %333 = shalt.err (!%p330_p6)
}
 0x15e   :  { %s334_s15 = scalar_lea.hbm %s426_s3, 256 }
 0x15f   :  { %p335_p7 = scmp.ne.s32.totalorder %s426_s3, %s334_s15  ;;  %p338_p8 = scmp.lt.u32.totalorder %s334_s15, %s426_s3 }
 0x161   :  { %p340_p9 = pnand %p338_p8, %p335_p7 }
 0x163   :  { %343 = shalt.err (!%p340_p9)
}
 0x164   :  { %170 = dma.vmem_to_hbm [thread:$0]  %s165_s12, 256, %s426_s3, [#allocation4], %s351_s22, %s351_s22, %s352_s23  }
 0x165   :  { %348 = dma.done.wait [#allocation4], 256  }
 0x166   :  { %349 = vsyncadd [#allocation4], 4294967040 }
 0x167   :  { %174 = vsyncpa [#allocation3], 1 }
 0x168   :  { %175 = vsyncpa [#allocation6], 1 }
 0x169   :  { %176 = vsyncpa [#allocation4], 1 }

</bundles_post_ra>
